<compile_context>
chip_gen: v6e
topology: v6e:2x2x1
jax: 0.10.0
libtpu: 0.0.40
codegen_flags: <defaults>
</compile_context>

<pallas_src>
import jax
import jax.numpy as jnp
from jax.experimental import pallas as pl
from jax.experimental.pallas import tpu as pltpu

_LANE = 128


def _round_up(n, m):
    return -(-n // m) * m


def _two_layer_kernel(x_ref, params_ref, b2_ref, o_ref):
    # x_ref:      (1, 1, TB)    VMEM   batch on lanes
    # params_ref: (hid_pad, 3)  VMEM   col0 = w1 column, col1 = b1, col2 = w2 row
    # b2_ref:     (1,)          SMEM   scalar output bias
    # o_ref:      (1, 1, TB)    VMEM
    x = x_ref[0]                                  # (1, TB)
    p = params_ref[...]                           # (hid_pad, 3)
    w1 = p[:, 0:1]                                # (hid_pad, 1)
    b1 = p[:, 1:2]                                # (hid_pad, 1)
    w2 = p[:, 2:3]                                # (hid_pad, 1)
    # Layer 1: K=1 "matmul" == broadcast outer product (pure VPU) + bias + ReLU.
    h = jnp.maximum(w1 * x + b1, 0.0)             # (hid_pad, TB)
    # Layer 2: N=1 "matmul" == sublane reduction over hidden (VALU adds).
    y = jnp.sum(h * w2, axis=0, keepdims=True) + b2_ref[0]   # (1, TB)
    o_ref[0] = y.astype(o_ref.dtype)


def pack_params(w1, b1, w2, b2):
    """One-time (init-time) packing of torch-style Linear parameters.

    w1: (hidden, 1), b1: (hidden,), w2: (1, hidden), b2: (1,)
    Returns (slab (hid_pad, 3) f32 with zero-padded rows, b2 (1,) f32).
    Hoists all transposes / reshapes out of the per-call path; padded rows are
    zero so they contribute exactly 0 to the output.
    """
    w1 = jnp.asarray(w1, jnp.float32)
    w2 = jnp.asarray(w2, jnp.float32)
    b1 = jnp.asarray(b1, jnp.float32)
    # TODO(synk): for input_size/output_size > 1, switch to an MXU jnp.dot path
    # (f32/bf16 inputs, f32 accum, 128/256-aligned tiles); this kernel
    # implements the 1 -> hidden -> 1 shapes the original module's data implies.
    assert w1.shape[1] == 1 and w2.shape[0] == 1, (
        "VPU fast path assumes input_size == output_size == 1")
    hid = w1.shape[0]
    hid_pad = max(_round_up(hid, 8), 8)
    slab = jnp.zeros((hid_pad, 3), jnp.float32)
    slab = slab.at[:hid, 0].set(w1[:, 0])
    slab = slab.at[:hid, 1].set(b1)
    slab = slab.at[:hid, 2].set(w2[0, :])
    return slab, jnp.asarray(b2, jnp.float32).reshape(1)


def two_layer_net_packed(x, slab, b2):
    """x: (B, 1), slab: (hid_pad, 3) f32, b2: (1,) f32 -> (B, 1) f32."""
    B, in_f = x.shape
    assert in_f == 1, "kernel implements the 1 -> hidden -> 1 module shapes"
    if x.dtype != jnp.float32:
        x = x.astype(jnp.float32)          # only pay the cast pass when needed
    hid_pad = slab.shape[0]

    # ---- lane-dense batch tile sized from a VMEM budget -------------------
    # Per lane of TB: h (hid_pad f32 rows) + double-buffered, 8-sublane-padded
    # x/out blocks.  Budget well under the tightest scoped default (v7x/v6e
    # 32 MiB; we raise v5e's 16 MiB default explicitly below).
    per_lane_bytes = 4 * (hid_pad + 32)
    budget = 12 * 1024 * 1024
    tb_cap = max((budget // per_lane_bytes) // _LANE, 1) * _LANE
    b_pad = _round_up(B, _LANE)
    tb = min(tb_cap, b_pad)
    if b_pad >= 4 * _LANE:
        # keep >= 2 grid steps so the "parallel" axis feeds both v7x TCs
        tb = min(tb, _round_up(-(-b_pad // 2), _LANE))
    g = -(-B // tb)                        # cdiv
    total = g * tb

    xf = x.reshape(B)
    if total != B:
        xf = jnp.pad(xf, (0, total - B))   # ragged edge only; same fixed tile
    x3 = xf.reshape(g, 1, tb)

    cost = pl.CostEstimate(
        flops=5 * total * hid_pad,
        transcendentals=0,
        bytes_accessed=8 * total + 12 * hid_pad + 4,
    )

    y3 = pl.pallas_call(
        _two_layer_kernel,
        out_shape=jax.ShapeDtypeStruct((g, 1, tb), jnp.float32),
        grid=(g,),
        in_specs=[
            pl.BlockSpec((1, 1, tb), lambda i: (i, 0, 0)),          # x: batch tile
            pl.BlockSpec((hid_pad, 3), lambda i: (0, 0)),           # params resident
            pl.BlockSpec(memory_space=pltpu.MemorySpace.SMEM),      # b2 scalar
        ],
        out_specs=pl.BlockSpec((1, 1, tb), lambda i: (i, 0, 0)),
        compiler_params=pltpu.CompilerParams(
            dimension_semantics=("parallel",),
            vmem_limit_bytes=32 * 1024 * 1024,
        ),
        cost_estimate=cost,
    )(x3, slab, b2)

    return y3.reshape(total)[:B].reshape(B, 1)


def two_layer_net(x, w1, b1, w2, b2):
    """Convenience wrapper (packs every call); prefer pack_params once +
    two_layer_net_packed in a real training/inference loop."""
    slab, b2s = pack_params(w1, b1, w2, b2)
    return two_layer_net_packed(x, slab, b2s)


if __name__ == "__main__":
    # shapes implied by the module: x = np.random.rand(100, 1) -> in=out=1
    batch, input_size, hidden_size, output_size = 100, 1, 32, 1

    key = jax.random.PRNGKey(0)
    kx, k1, kb1, k2, kb2 = jax.random.split(key, 5)

    x = jax.random.uniform(kx, (batch, input_size), dtype=jnp.float32)
    # deterministic "torch-style" parameter init (uniform in +/- 1/sqrt(fan_in))
    lim1 = 1.0 / (input_size ** 0.5)
    lim2 = 1.0 / (hidden_size ** 0.5)
    w1 = jax.random.uniform(k1, (hidden_size, input_size), jnp.float32, -lim1, lim1)
    b1 = jax.random.uniform(kb1, (hidden_size,), jnp.float32, -lim1, lim1)
    w2 = jax.random.uniform(k2, (output_size, hidden_size), jnp.float32, -lim2, lim2)
    b2 = jax.random.uniform(kb2, (output_size,), jnp.float32, -lim2, lim2)

    # Hoist parameter packing / transposes out of the per-call path.
    slab, b2s = pack_params(w1, b1, w2, b2)
    fwd = jax.jit(two_layer_net_packed)

    y = fwd(x, slab, b2s)
    jax.block_until_ready(y)

    # sanity check against pure-JAX reference
    ref = jnp.maximum(x @ w1.T + b1, 0.0) @ w2.T + b2
    assert y.shape == (batch, output_size)
    assert jnp.allclose(y, ref, atol=1e-5), "mismatch vs reference"

    print("KERNEL_OK")
</pallas_src>

<mosaic_0001>
module attributes {stable_mosaic.version = 11 : i64} {
  func.func @_two_layer_kernel(%arg0: i32, %arg1: memref<1x1x128xf32, #tpu.memory_space<vmem>>, %arg2: memref<32x3xf32, #tpu.memory_space<vmem>>, %arg3: memref<1xf32, #tpu.memory_space<smem>>, %arg4: memref<1x1x128xf32, #tpu.memory_space<vmem>>) attributes {dimension_semantics = [#tpu.dimension_semantics<parallel>], iteration_bounds = array<i64: 1>, scalar_prefetch = 0 : i64, scratch_operands = 0 : i64, tpu.core_type = #tpu.core_type<tc>, window_params = [{transform_indices = @transform_0, window_bounds = array<i64: 1, 1, 128>}, {pipeline_mode = #tpu.pipeline_mode<synchronous>, transform_indices = @transform_1, window_bounds = array<i64: 32, 3>}, {transform_indices = @transform_2, window_bounds = array<i64: 1>}, {transform_indices = @transform_3, window_bounds = array<i64: 1, 1, 128>}]} {
    %c0 = arith.constant 0 : index
    %c0_0 = arith.constant 0 : index
    %c0_1 = arith.constant 0 : index
    %0 = vector.load %arg1[%c0, %c0_0, %c0_1] : memref<1x1x128xf32, #tpu.memory_space<vmem>>, vector<1x1x128xf32>
    %1 = vector.shape_cast %0 : vector<1x1x128xf32> to vector<1x128xf32>
    %c0_2 = arith.constant 0 : index
    %c0_3 = arith.constant 0 : index
    %2 = vector.load %arg2[%c0_2, %c0_3] : memref<32x3xf32, #tpu.memory_space<vmem>>, vector<32x3xf32>
    %3 = vector.extract_strided_slice %2 {offsets = [0, 0], sizes = [32, 1], strides = [1, 1]} : vector<32x3xf32> to vector<32x1xf32>
    %4 = vector.extract_strided_slice %2 {offsets = [0, 1], sizes = [32, 1], strides = [1, 1]} : vector<32x3xf32> to vector<32x1xf32>
    %5 = vector.extract_strided_slice %2 {offsets = [0, 2], sizes = [32, 1], strides = [1, 1]} : vector<32x3xf32> to vector<32x1xf32>
    %6 = vector.broadcast %3 : vector<32x1xf32> to vector<32x128xf32>
    %7 = vector.broadcast %1 : vector<1x128xf32> to vector<32x128xf32>
    %8 = arith.mulf %6, %7 : vector<32x128xf32>
    %9 = vector.broadcast %4 : vector<32x1xf32> to vector<32x128xf32>
    %10 = arith.addf %8, %9 : vector<32x128xf32>
    %cst = arith.constant 0.000000e+00 : f32
    %11 = vector.broadcast %cst : f32 to vector<32x128xf32>
    %12 = arith.maximumf %10, %11 : vector<32x128xf32>
    %13 = vector.broadcast %5 : vector<32x1xf32> to vector<32x128xf32>
    %14 = arith.mulf %12, %13 : vector<32x128xf32>
    %cst_4 = arith.constant dense<0.000000e+00> : vector<128xf32>
    %15 = vector.multi_reduction <add>, %14, %cst_4 [0] : vector<32x128xf32> to vector<128xf32>
    %16 = vector.shape_cast %15 : vector<128xf32> to vector<1x128xf32>
    %c0_5 = arith.constant 0 : index
    %17 = memref.load %arg3[%c0_5] : memref<1xf32, #tpu.memory_space<smem>>
    %18 = vector.broadcast %17 : f32 to vector<1x128xf32>
    %19 = arith.addf %16, %18 : vector<1x128xf32>
    %c0_6 = arith.constant 0 : index
    %c0_7 = arith.constant 0 : index
    %c0_8 = arith.constant 0 : index
    %20 = vector.load %arg4[%c0_6, %c0_7, %c0_8] : memref<1x1x128xf32, #tpu.memory_space<vmem>>, vector<1x1x128xf32>
    %21 = vector.shape_cast %20 : vector<1x1x128xf32> to vector<1x128xf32>
    %22 = vector.shape_cast %19 : vector<1x128xf32> to vector<1x1x128xf32>
    tpu.vector_store %arg4[%c0_6, %c0_7, %c0_8], %22 {strides = array<i32>} : memref<1x1x128xf32, #tpu.memory_space<vmem>>, vector<1x1x128xf32>,
    return
  }
  func.func @transform_0(%arg0: i32) -> (i32, i32, i32) {
    %c0_i32 = arith.constant 0 : i32
    %c0_i32_0 = arith.constant 0 : i32
    %c0_i32_1 = arith.constant 0 : i32
    return %arg0, %c0_i32, %c0_i32_0 : i32, i32, i32
  }
  func.func @transform_1(%arg0: i32) -> (i32, i32) {
    %c0_i32 = arith.constant 0 : i32
    %c0_i32_0 = arith.constant 0 : i32
    %c0_i32_1 = arith.constant 0 : i32
    return %c0_i32, %c0_i32_0 : i32, i32
  }
  func.func @transform_2(%arg0: i32) -> i32 {
    %c0_i32 = arith.constant 0 : i32
    %c0_i32_0 = arith.constant 0 : i32
    return %c0_i32 : i32
  }
  func.func @transform_3(%arg0: i32) -> (i32, i32, i32) {
    %c0_i32 = arith.constant 0 : i32
    %c0_i32_0 = arith.constant 0 : i32
    %c0_i32_1 = arith.constant 0 : i32
    return %arg0, %c0_i32, %c0_i32_0 : i32, i32, i32
  }
}

</mosaic_0001>

<bundles_post_ra>
// kernel: two_layer_net_packed.1
= control target key start
LH: loop header
LB: loop body
LE: loop exit
PB: predicated region body
PF: predicated region fallthrough
CT: control target
= control target key end

     0   :  { %v123_v0 = vmov 0   ;;  %v124_v4 = vmov 1   ;;  %v125_v6 = vmov 2   ;;  %s167_s1 = inlined_call_operand.vmem [shape: f32[32,3], index: 1, kind: input, shape index: {}]   ;;  %s168_s0 = inlined_call_operand.vmem [shape: f32[1,1,128], index: 0, kind: input, shape index: {}]   ;;  %s169_s2 = inlined_call_operand.<no memory space> [shape: f32[1], index: 2, kind: input, shape index: {}]   ;;  %s170_s3 = inlined_call_operand.vmem [shape: f32[1,1,128], index: 3, kind: output, shape index: {}]  }
   0x1   :  { %116 = vset.pattern.permute.xlu1 %v123_v0  ;;  %115 = vset.pattern.permute.xlu0 %v123_v0  ;;  %v18_v1 = vld [vmem:[%s167_s1 + $0x10] sm:$0xff]  ;;  %v16_v2 = vld [vmem:[%s167_s1] sm:$0xff]  ;;  %v17_v3 = vld [vmem:[%s167_s1 + $0x8] sm:$0xff]  ;;  %v104_v44 = vstv %s169_s2 }
   0x2   :  { %32 = vperm.xlu1 %116, %v18_v1   ;;  %22 = vperm.xlu0 %115, %v16_v2   ;;  %v19_v5 = vld [vmem:[%s167_s1 + $0x18] sm:$0xff]  ;;  %v111_v13 = vld [vmem:[%s168_s0] ss:$0 sm:$0xff] }
   0x6   :  { %117 = vset.pattern.permute.xlu1 %v124_v4  ;;  %27 = vperm.xlu0 %115, %v17_v3  }
   0x7   :  { %51 = vperm.xlu1 %117, %v16_v2  }
   0xa   :  { %118 = vset.pattern.permute.xlu0 %v124_v4 }
   0xb   :  { %119 = vset.pattern.permute.xlu1 %v123_v0  ;;  %55 = vperm.xlu0 %118, %v17_v3  }
   0xc   :  { %37 = vperm.xlu1 %119, %v19_v5  }
   0xf   :  { %63 = vperm.xlu0 %118, %v19_v5  }
  0x10   :  { %120 = vset.pattern.permute.xlu1 %v124_v4 }
  0x11   :  { %59 = vperm.xlu1 %120, %v18_v1  }
  0x13   :  { %122 = vset.pattern.permute.xlu0 %v125_v6 }
  0x14   :  { %79 = vperm.xlu0 %122, %v17_v3  }
  0x15   :  { %121 = vset.pattern.permute.xlu1 %v125_v6 }
  0x16   :  { %75 = vperm.xlu1 %121, %v16_v2  }
  0x1a   :  { %83 = vperm.xlu1 %121, %v18_v1  }
  0x1e   :  { %87 = vperm.xlu1 %121, %v19_v5  }
  0x7d   :  { %v33_v7 = vpop.permute.xlu1 %32  ;;  %v23_v8 = vpop.permute.xlu0 %22 }
  0x7e   :  { %v46_v14 = vmul.f32 %v111_v13, %v23_v8  ;;  %v48_v18 = vmul.f32 %v111_v13, %v33_v7 }
  0x81   :  { %v28_v9 = vpop.permute.xlu0 %27 }
  0x82   :  { %v52_v10 = vpop.permute.xlu1 %51  ;;  %v47_v15 = vmul.f32 %v111_v13, %v28_v9 }
  0x83   :  { %v66_v19 = vadd.f32 %v52_v10, %v46_v14 }
  0x85   :  { %v70_v24 = vmax.f32 %v66_v19, 0.0 }
  0x86   :  { %v56_v11 = vpop.permute.xlu0 %55 }
  0x87   :  { %v38_v12 = vpop.permute.xlu1 %37  ;;  %v67_v20 = vadd.f32 %v56_v11, %v47_v15 }
  0x88   :  { %v49_v21 = vmul.f32 %v111_v13, %v38_v12 }
  0x89   :  { %v71_v26 = vmax.f32 %v67_v20, 0.0 }
  0x8a   :  { %v64_v17 = vpop.permute.xlu0 %63 }
  0x8b   :  { %v69_v27 = vadd.f32 %v64_v17, %v49_v21 }
  0x8c   :  { %v60_v16 = vpop.permute.xlu1 %59 }
  0x8d   :  { %v68_v22 = vadd.f32 %v60_v16, %v48_v18  ;;  %v73_v33 = vmax.f32 %v69_v27, 0.0 }
  0x8f   :  { %v80_v25 = vpop.permute.xlu0 %79  ;;  %v72_v28 = vmax.f32 %v68_v22, 0.0 }
  0x90   :  { %v91_v31 = vmul.f32 %v80_v25, %v71_v26 }
  0x91   :  { %v76_v23 = vpop.permute.xlu1 %75 }
  0x92   :  { %v90_v29 = vmul.f32 %v76_v23, %v70_v24 }
  0x94   :  { %v94_v34 = vadd.f32 %v91_v31, %v90_v29 }
  0x95   :  { %v84_v30 = vpop.permute.xlu1 %83 }
  0x96   :  { %v92_v32 = vmul.f32 %v84_v30, %v72_v28 }
  0x98   :  { %v95_v36 = vadd.f32 %v94_v34, %v92_v32 }
  0x99   :  { %v88_v35 = vpop.permute.xlu1 %87 }
  0x9a   :  { %v93_v37 = vmul.f32 %v88_v35, %v73_v33 }
  0x9c   :  { %v96_v38 = vadd.f32 %v95_v36, %v93_v37 }
  0x9e   :  { %v97_v39 = vrot.slane %v96_v38, 4 }
  0xa0   :  { %v98_v40 = vadd.f32 %v97_v39, %v96_v38 }
  0xa2   :  { %v99_v41 = vrot.slane %v98_v40, 2 }
  0xa4   :  { %v100_v42 = vadd.f32 %v99_v41, %v98_v40 }
  0xa6   :  { %v101_v43 = vrot.slane %v100_v42, 1 }
  0xa8   :  { %v102_v45 = vadd.f32 %v101_v43, %v100_v42 }
  0xaa   :  { %v105_v46 = vadd.f32 %v104_v44, %v102_v45 }
  0xac   :  { %106 = vst [vmem:[%s170_s3] sm:$0x1] %v105_v46 }

</bundles_post_ra>
